<compile_context>
chip_gen: v7x
topology: tpu7x:2x2x1
jax: 0.10.0
libtpu: 0.0.40
codegen_flags: <defaults>
</compile_context>

<pallas_src>
import jax
import jax.numpy as jnp
from jax.experimental import pallas as pl
from jax.experimental.pallas import tpu as pltpu


# ---------------------------------------------------------------------------
# Glue: axis-angle -> rotation matrix (exact port of SMPL-X batch_rodrigues)
# ---------------------------------------------------------------------------
def batch_rodrigues(rot_vecs, epsilon=1e-8):
    """rot_vecs: (B, 3) axis-angle -> (B, 3, 3) rotation matrices."""
    angle = jnp.linalg.norm(rot_vecs + epsilon, axis=1, keepdims=True)     # (B, 1)
    rot_dir = rot_vecs / angle                                             # (B, 3)
    cos = jnp.cos(angle)[:, None, :]                                       # (B, 1, 1)
    sin = jnp.sin(angle)[:, None, :]                                       # (B, 1, 1)

    rx, ry, rz = rot_dir[:, 0], rot_dir[:, 1], rot_dir[:, 2]
    zeros = jnp.zeros_like(rx)
    K = jnp.stack(
        [zeros, -rz, ry,
         rz, zeros, -rx,
         -ry, rx, zeros], axis=1).reshape(-1, 3, 3)                        # (B, 3, 3)

    ident = jnp.eye(3, dtype=rot_vecs.dtype)[None]
    rot_mat = ident + sin * K + (1.0 - cos) * jnp.matmul(K, K)
    return rot_mat


# ---------------------------------------------------------------------------
# Pallas kernel: per (batch, vertex-tile) block, lane-dense (3, TN) tiles.
#   vertsT[c, :] = r[0,c]*vT[0,:] + r[1,c]*vT[1,:] + r[2,c]*vT[2,:] + t[c]
#   normsT[c, :] = r[0,c]*nT[0,:] + r[1,c]*nT[1,:] + r[2,c]*nT[2,:]
# rot / transl arrive flattened in SMEM via scalar prefetch and are read as scalars.
# ---------------------------------------------------------------------------
def _object_model_kernel(rot_s, t_s, v_ref, n_ref, verts_ref, norms_ref):
    b = pl.program_id(0)

    # 3x3 rotation and 3-vector translation as SMEM scalars for this batch.
    r = [[rot_s[b * 9 + k * 3 + c] for c in range(3)] for k in range(3)]
    t = [t_s[b * 3 + c] for c in range(3)]

    # Lane-dense channel rows: each is (1, TN).
    v0 = v_ref[0, 0:1, :]
    v1 = v_ref[0, 1:2, :]
    v2 = v_ref[0, 2:3, :]
    n0 = n_ref[0, 0:1, :]
    n1 = n_ref[0, 1:2, :]
    n2 = n_ref[0, 2:3, :]

    # 9 FMAs per output array on the VPU; no MXU involvement.
    for c in range(3):
        verts_ref[0, c:c + 1, :] = (r[0][c] * v0 + r[1][c] * v1
                                    + r[2][c] * v2 + t[c])
        norms_ref[0, c:c + 1, :] = (r[0][c] * n0 + r[1][c] * n1
                                    + r[2][c] * n2)


def object_model_forward(global_orient, transl, v_template, n_template,
                         rotmat=False, *, vert_tile=2048):
    """Pallas implementation of ObjectModel.forward.

    Returns (vertices, vertex_normals, global_orient, transl) matching the
    PyTorch namedtuple fields (vertices / vertex_normals are (B, N, 3) f32).
    """
    B, N, _ = v_template.shape
    assert vert_tile % 128 == 0, "vert_tile must be a multiple of 128 lanes"

    if not rotmat:
        rot_mats = batch_rodrigues(global_orient.reshape(-1, 3)).reshape(B, 3, 3)
    else:
        rot_mats = global_orient.reshape(B, 3, 3)

    rot_flat = rot_mats.reshape(B * 9).astype(jnp.float32)        # SMEM scalars
    t_flat = transl.reshape(B * 3).astype(jnp.float32)            # SMEM scalars

    # Pick lane-dense tile width: whole (padded) N per batch if it fits vert_tile,
    # otherwise vert_tile-wide tiles.  Pad vertex count up to the tile width.
    n_pad128 = ((N + 127) // 128) * 128
    if n_pad128 <= vert_tile:
        tn = n_pad128
        n_pad = n_pad128
    else:
        tn = vert_tile
        n_pad = ((N + tn - 1) // tn) * tn

    # Lane-dense templates: (B, 3, n_pad) — channels on sublanes, vertices on lanes.
    # (In a real deployment these are static per object and would be pre-transposed.)
    vT = jnp.transpose(v_template, (0, 2, 1)).astype(jnp.float32)
    nT = jnp.transpose(n_template, (0, 2, 1)).astype(jnp.float32)
    if n_pad != N:
        pad = ((0, 0), (0, 0), (0, n_pad - N))
        vT = jnp.pad(vT, pad)
        nT = jnp.pad(nT, pad)

    grid = (B, n_pad // tn)

    tmpl_spec = pl.BlockSpec((1, 3, tn), lambda b, i, rot, t: (b, 0, i))
    out_spec = pl.BlockSpec((1, 3, tn), lambda b, i, rot, t: (b, 0, i))

    cost = pl.CostEstimate(
        flops=36 * B * n_pad,
        transcendentals=0,
        bytes_accessed=4 * 3 * B * n_pad * 4,   # 2 reads + 2 writes of (B,3,n_pad) f32
    )

    verts_T, norms_T = pl.pallas_call(
        _object_model_kernel,
        out_shape=(
            jax.ShapeDtypeStruct((B, 3, n_pad), jnp.float32),
            jax.ShapeDtypeStruct((B, 3, n_pad), jnp.float32),
        ),
        grid_spec=pltpu.PrefetchScalarGridSpec(
            num_scalar_prefetch=2,
            grid=grid,
            in_specs=[tmpl_spec, tmpl_spec],
            out_specs=[out_spec, out_spec],
        ),
        compiler_params=pltpu.CompilerParams(
            dimension_semantics=("parallel", "parallel")),
        cost_estimate=cost,
    )(rot_flat, t_flat, vT, nT)

    # Transpose back to the channel-last layout of the PyTorch module only at the
    # boundary (a lane-dense consumer could use verts_T / norms_T directly).
    verts = jnp.transpose(verts_T[:, :, :N], (0, 2, 1))
    norms = jnp.transpose(norms_T[:, :, :N], (0, 2, 1))
    return verts, norms, global_orient, transl


# ---------------------------------------------------------------------------
# Reference (pure JAX) for sanity check
# ---------------------------------------------------------------------------
def object_model_reference(global_orient, transl, v_template, n_template, rotmat=False):
    B = v_template.shape[0]
    if not rotmat:
        rot_mats = batch_rodrigues(global_orient.reshape(-1, 3)).reshape(B, 3, 3)
    else:
        rot_mats = global_orient.reshape(B, 3, 3)
    vertices = jnp.matmul(v_template, rot_mats) + transl[:, None, :]
    vertex_normals = jnp.matmul(n_template, rot_mats)
    return vertices, vertex_normals


if __name__ == "__main__":
    key = jax.random.PRNGKey(0)
    k1, k2, k3, k4 = jax.random.split(key, 4)

    B = 2        # batch_size
    N = 500      # object template vertex count (not a multiple of 128 -> exercises padding)

    v_template = jax.random.normal(k1, (B, N, 3), dtype=jnp.float32)
    n_template = jax.random.normal(k2, (B, N, 3), dtype=jnp.float32)
    global_orient = 0.5 * jax.random.normal(k3, (B, 3), dtype=jnp.float32)
    transl = jax.random.normal(k4, (B, 3), dtype=jnp.float32)

    verts, norms, go, tr = object_model_forward(
        global_orient, transl, v_template, n_template, rotmat=False)
    jax.block_until_ready((verts, norms))

    ref_v, ref_n = object_model_reference(
        global_orient, transl, v_template, n_template, rotmat=False)
    assert verts.shape == ref_v.shape and norms.shape == ref_n.shape
    assert jnp.allclose(verts, ref_v, atol=1e-5), "vertices mismatch"
    assert jnp.allclose(norms, ref_n, atol=1e-5), "vertex_normals mismatch"

    # Also check the rotmat=True path (global_orient given directly as 3x3).
    rot_in = batch_rodrigues(global_orient.reshape(-1, 3)).reshape(B, 3, 3)
    verts2, norms2, _, _ = object_model_forward(
        rot_in, transl, v_template, n_template, rotmat=True)
    jax.block_until_ready((verts2, norms2))
    assert jnp.allclose(verts2, ref_v, atol=1e-5), "vertices mismatch (rotmat path)"
    assert jnp.allclose(norms2, ref_n, atol=1e-5), "vertex_normals mismatch (rotmat path)"

    print("KERNEL_OK")
</pallas_src>

<mosaic_0001>
module attributes {stable_mosaic.version = 11 : i64} {
  func.func @_object_model_kernel(%arg0: i32, %arg1: i32, %arg2: memref<18xf32, #tpu.memory_space<smem>>, %arg3: memref<6xf32, #tpu.memory_space<smem>>, %arg4: memref<1x3x512xf32, #tpu.memory_space<vmem>>, %arg5: memref<1x3x512xf32, #tpu.memory_space<vmem>>, %arg6: memref<1x3x512xf32, #tpu.memory_space<vmem>>, %arg7: memref<1x3x512xf32, #tpu.memory_space<vmem>>) attributes {dimension_semantics = [#tpu.dimension_semantics<parallel>, #tpu.dimension_semantics<parallel>], iteration_bounds = array<i64: 2, 1>, scalar_prefetch = 2 : i64, scratch_operands = 0 : i64, tpu.core_type = #tpu.core_type<tc>, window_params = [{transform_indices = @transform_0, window_bounds = array<i64: 1, 3, 512>}, {transform_indices = @transform_1, window_bounds = array<i64: 1, 3, 512>}, {transform_indices = @transform_2, window_bounds = array<i64: 1, 3, 512>}, {transform_indices = @transform_3, window_bounds = array<i64: 1, 3, 512>}]} {
    %c9_i32 = arith.constant 9 : i32
    %0 = arith.muli %arg0, %c9_i32 : i32
    %c0_i32 = arith.constant 0 : i32
    %1 = arith.addi %0, %c0_i32 : i32
    %c0_i32_0 = arith.constant 0 : i32
    %2 = arith.addi %1, %c0_i32_0 : i32
    %3 = arith.index_cast %2 : i32 to index
    %4 = memref.load %arg2[%3] : memref<18xf32, #tpu.memory_space<smem>>
    %c9_i32_1 = arith.constant 9 : i32
    %5 = arith.muli %arg0, %c9_i32_1 : i32
    %c0_i32_2 = arith.constant 0 : i32
    %6 = arith.addi %5, %c0_i32_2 : i32
    %c1_i32 = arith.constant 1 : i32
    %7 = arith.addi %6, %c1_i32 : i32
    %8 = arith.index_cast %7 : i32 to index
    %9 = memref.load %arg2[%8] : memref<18xf32, #tpu.memory_space<smem>>
    %c9_i32_3 = arith.constant 9 : i32
    %10 = arith.muli %arg0, %c9_i32_3 : i32
    %c0_i32_4 = arith.constant 0 : i32
    %11 = arith.addi %10, %c0_i32_4 : i32
    %c2_i32 = arith.constant 2 : i32
    %12 = arith.addi %11, %c2_i32 : i32
    %13 = arith.index_cast %12 : i32 to index
    %14 = memref.load %arg2[%13] : memref<18xf32, #tpu.memory_space<smem>>
    %c9_i32_5 = arith.constant 9 : i32
    %15 = arith.muli %arg0, %c9_i32_5 : i32
    %c3_i32 = arith.constant 3 : i32
    %16 = arith.addi %15, %c3_i32 : i32
    %c0_i32_6 = arith.constant 0 : i32
    %17 = arith.addi %16, %c0_i32_6 : i32
    %18 = arith.index_cast %17 : i32 to index
    %19 = memref.load %arg2[%18] : memref<18xf32, #tpu.memory_space<smem>>
    %c9_i32_7 = arith.constant 9 : i32
    %20 = arith.muli %arg0, %c9_i32_7 : i32
    %c3_i32_8 = arith.constant 3 : i32
    %21 = arith.addi %20, %c3_i32_8 : i32
    %c1_i32_9 = arith.constant 1 : i32
    %22 = arith.addi %21, %c1_i32_9 : i32
    %23 = arith.index_cast %22 : i32 to index
    %24 = memref.load %arg2[%23] : memref<18xf32, #tpu.memory_space<smem>>
    %c9_i32_10 = arith.constant 9 : i32
    %25 = arith.muli %arg0, %c9_i32_10 : i32
    %c3_i32_11 = arith.constant 3 : i32
    %26 = arith.addi %25, %c3_i32_11 : i32
    %c2_i32_12 = arith.constant 2 : i32
    %27 = arith.addi %26, %c2_i32_12 : i32
    %28 = arith.index_cast %27 : i32 to index
    %29 = memref.load %arg2[%28] : memref<18xf32, #tpu.memory_space<smem>>
    %c9_i32_13 = arith.constant 9 : i32
    %30 = arith.muli %arg0, %c9_i32_13 : i32
    %c6_i32 = arith.constant 6 : i32
    %31 = arith.addi %30, %c6_i32 : i32
    %c0_i32_14 = arith.constant 0 : i32
    %32 = arith.addi %31, %c0_i32_14 : i32
    %33 = arith.index_cast %32 : i32 to index
    %34 = memref.load %arg2[%33] : memref<18xf32, #tpu.memory_space<smem>>
    %c9_i32_15 = arith.constant 9 : i32
    %35 = arith.muli %arg0, %c9_i32_15 : i32
    %c6_i32_16 = arith.constant 6 : i32
    %36 = arith.addi %35, %c6_i32_16 : i32
    %c1_i32_17 = arith.constant 1 : i32
    %37 = arith.addi %36, %c1_i32_17 : i32
    %38 = arith.index_cast %37 : i32 to index
    %39 = memref.load %arg2[%38] : memref<18xf32, #tpu.memory_space<smem>>
    %c9_i32_18 = arith.constant 9 : i32
    %40 = arith.muli %arg0, %c9_i32_18 : i32
    %c6_i32_19 = arith.constant 6 : i32
    %41 = arith.addi %40, %c6_i32_19 : i32
    %c2_i32_20 = arith.constant 2 : i32
    %42 = arith.addi %41, %c2_i32_20 : i32
    %43 = arith.index_cast %42 : i32 to index
    %44 = memref.load %arg2[%43] : memref<18xf32, #tpu.memory_space<smem>>
    %c3_i32_21 = arith.constant 3 : i32
    %45 = arith.muli %arg0, %c3_i32_21 : i32
    %c0_i32_22 = arith.constant 0 : i32
    %46 = arith.addi %45, %c0_i32_22 : i32
    %47 = arith.index_cast %46 : i32 to index
    %48 = memref.load %arg3[%47] : memref<6xf32, #tpu.memory_space<smem>>
    %c3_i32_23 = arith.constant 3 : i32
    %49 = arith.muli %arg0, %c3_i32_23 : i32
    %c1_i32_24 = arith.constant 1 : i32
    %50 = arith.addi %49, %c1_i32_24 : i32
    %51 = arith.index_cast %50 : i32 to index
    %52 = memref.load %arg3[%51] : memref<6xf32, #tpu.memory_space<smem>>
    %c3_i32_25 = arith.constant 3 : i32
    %53 = arith.muli %arg0, %c3_i32_25 : i32
    %c2_i32_26 = arith.constant 2 : i32
    %54 = arith.addi %53, %c2_i32_26 : i32
    %55 = arith.index_cast %54 : i32 to index
    %56 = memref.load %arg3[%55] : memref<6xf32, #tpu.memory_space<smem>>
    %c0 = arith.constant 0 : index
    %c0_27 = arith.constant 0 : index
    %c0_28 = arith.constant 0 : index
    %57 = vector.load %arg4[%c0, %c0_27, %c0_28] : memref<1x3x512xf32, #tpu.memory_space<vmem>>, vector<1x1x512xf32>
    %58 = vector.shape_cast %57 : vector<1x1x512xf32> to vector<1x512xf32>
    %c0_29 = arith.constant 0 : index
    %c1 = arith.constant 1 : index
    %c0_30 = arith.constant 0 : index
    %59 = vector.load %arg4[%c0_29, %c1, %c0_30] : memref<1x3x512xf32, #tpu.memory_space<vmem>>, vector<1x1x512xf32>
    %60 = vector.shape_cast %59 : vector<1x1x512xf32> to vector<1x512xf32>
    %c0_31 = arith.constant 0 : index
    %c2 = arith.constant 2 : index
    %c0_32 = arith.constant 0 : index
    %61 = vector.load %arg4[%c0_31, %c2, %c0_32] : memref<1x3x512xf32, #tpu.memory_space<vmem>>, vector<1x1x512xf32>
    %62 = vector.shape_cast %61 : vector<1x1x512xf32> to vector<1x512xf32>
    %c0_33 = arith.constant 0 : index
    %c0_34 = arith.constant 0 : index
    %c0_35 = arith.constant 0 : index
    %63 = vector.load %arg5[%c0_33, %c0_34, %c0_35] : memref<1x3x512xf32, #tpu.memory_space<vmem>>, vector<1x1x512xf32>
    %64 = vector.shape_cast %63 : vector<1x1x512xf32> to vector<1x512xf32>
    %c0_36 = arith.constant 0 : index
    %c1_37 = arith.constant 1 : index
    %c0_38 = arith.constant 0 : index
    %65 = vector.load %arg5[%c0_36, %c1_37, %c0_38] : memref<1x3x512xf32, #tpu.memory_space<vmem>>, vector<1x1x512xf32>
    %66 = vector.shape_cast %65 : vector<1x1x512xf32> to vector<1x512xf32>
    %c0_39 = arith.constant 0 : index
    %c2_40 = arith.constant 2 : index
    %c0_41 = arith.constant 0 : index
    %67 = vector.load %arg5[%c0_39, %c2_40, %c0_41] : memref<1x3x512xf32, #tpu.memory_space<vmem>>, vector<1x1x512xf32>
    %68 = vector.shape_cast %67 : vector<1x1x512xf32> to vector<1x512xf32>
    %69 = vector.broadcast %4 : f32 to vector<1x512xf32>
    %70 = arith.mulf %69, %58 : vector<1x512xf32>
    %71 = vector.broadcast %19 : f32 to vector<1x512xf32>
    %72 = arith.mulf %71, %60 : vector<1x512xf32>
    %73 = arith.addf %70, %72 : vector<1x512xf32>
    %74 = vector.broadcast %34 : f32 to vector<1x512xf32>
    %75 = arith.mulf %74, %62 : vector<1x512xf32>
    %76 = arith.addf %73, %75 : vector<1x512xf32>
    %77 = vector.broadcast %48 : f32 to vector<1x512xf32>
    %78 = arith.addf %76, %77 : vector<1x512xf32>
    %c0_42 = arith.constant 0 : index
    %c0_43 = arith.constant 0 : index
    %c0_44 = arith.constant 0 : index
    %79 = vector.load %arg6[%c0_42, %c0_43, %c0_44] : memref<1x3x512xf32, #tpu.memory_space<vmem>>, vector<1x1x512xf32>
    %80 = vector.shape_cast %79 : vector<1x1x512xf32> to vector<1x512xf32>
    %81 = vector.shape_cast %78 : vector<1x512xf32> to vector<1x1x512xf32>
    tpu.vector_store %arg6[%c0_42, %c0_43, %c0_44], %81 {strides = array<i32>} : memref<1x3x512xf32, #tpu.memory_space<vmem>>, vector<1x1x512xf32>,
    %82 = vector.broadcast %4 : f32 to vector<1x512xf32>
    %83 = arith.mulf %82, %64 : vector<1x512xf32>
    %84 = vector.broadcast %19 : f32 to vector<1x512xf32>
    %85 = arith.mulf %84, %66 : vector<1x512xf32>
    %86 = arith.addf %83, %85 : vector<1x512xf32>
    %87 = vector.broadcast %34 : f32 to vector<1x512xf32>
    %88 = arith.mulf %87, %68 : vector<1x512xf32>
    %89 = arith.addf %86, %88 : vector<1x512xf32>
    %c0_45 = arith.constant 0 : index
    %c0_46 = arith.constant 0 : index
    %c0_47 = arith.constant 0 : index
    %90 = vector.load %arg7[%c0_45, %c0_46, %c0_47] : memref<1x3x512xf32, #tpu.memory_space<vmem>>, vector<1x1x512xf32>
    %91 = vector.shape_cast %90 : vector<1x1x512xf32> to vector<1x512xf32>
    %92 = vector.shape_cast %89 : vector<1x512xf32> to vector<1x1x512xf32>
    tpu.vector_store %arg7[%c0_45, %c0_46, %c0_47], %92 {strides = array<i32>} : memref<1x3x512xf32, #tpu.memory_space<vmem>>, vector<1x1x512xf32>,
    %93 = vector.broadcast %9 : f32 to vector<1x512xf32>
    %94 = arith.mulf %93, %58 : vector<1x512xf32>
    %95 = vector.broadcast %24 : f32 to vector<1x512xf32>
    %96 = arith.mulf %95, %60 : vector<1x512xf32>
    %97 = arith.addf %94, %96 : vector<1x512xf32>
    %98 = vector.broadcast %39 : f32 to vector<1x512xf32>
    %99 = arith.mulf %98, %62 : vector<1x512xf32>
    %100 = arith.addf %97, %99 : vector<1x512xf32>
    %101 = vector.broadcast %52 : f32 to vector<1x512xf32>
    %102 = arith.addf %100, %101 : vector<1x512xf32>
    %c0_48 = arith.constant 0 : index
    %c1_49 = arith.constant 1 : index
    %c0_50 = arith.constant 0 : index
    %103 = vector.load %arg6[%c0_48, %c1_49, %c0_50] : memref<1x3x512xf32, #tpu.memory_space<vmem>>, vector<1x1x512xf32>
    %104 = vector.shape_cast %103 : vector<1x1x512xf32> to vector<1x512xf32>
    %105 = vector.shape_cast %102 : vector<1x512xf32> to vector<1x1x512xf32>
    tpu.vector_store %arg6[%c0_48, %c1_49, %c0_50], %105 {strides = array<i32>} : memref<1x3x512xf32, #tpu.memory_space<vmem>>, vector<1x1x512xf32>,
    %106 = vector.broadcast %9 : f32 to vector<1x512xf32>
    %107 = arith.mulf %106, %64 : vector<1x512xf32>
    %108 = vector.broadcast %24 : f32 to vector<1x512xf32>
    %109 = arith.mulf %108, %66 : vector<1x512xf32>
    %110 = arith.addf %107, %109 : vector<1x512xf32>
    %111 = vector.broadcast %39 : f32 to vector<1x512xf32>
    %112 = arith.mulf %111, %68 : vector<1x512xf32>
    %113 = arith.addf %110, %112 : vector<1x512xf32>
    %c0_51 = arith.constant 0 : index
    %c1_52 = arith.constant 1 : index
    %c0_53 = arith.constant 0 : index
    %114 = vector.load %arg7[%c0_51, %c1_52, %c0_53] : memref<1x3x512xf32, #tpu.memory_space<vmem>>, vector<1x1x512xf32>
    %115 = vector.shape_cast %114 : vector<1x1x512xf32> to vector<1x512xf32>
    %116 = vector.shape_cast %113 : vector<1x512xf32> to vector<1x1x512xf32>
    tpu.vector_store %arg7[%c0_51, %c1_52, %c0_53], %116 {strides = array<i32>} : memref<1x3x512xf32, #tpu.memory_space<vmem>>, vector<1x1x512xf32>,
    %117 = vector.broadcast %14 : f32 to vector<1x512xf32>
    %118 = arith.mulf %117, %58 : vector<1x512xf32>
    %119 = vector.broadcast %29 : f32 to vector<1x512xf32>
    %120 = arith.mulf %119, %60 : vector<1x512xf32>
    %121 = arith.addf %118, %120 : vector<1x512xf32>
    %122 = vector.broadcast %44 : f32 to vector<1x512xf32>
    %123 = arith.mulf %122, %62 : vector<1x512xf32>
    %124 = arith.addf %121, %123 : vector<1x512xf32>
    %125 = vector.broadcast %56 : f32 to vector<1x512xf32>
    %126 = arith.addf %124, %125 : vector<1x512xf32>
    %c0_54 = arith.constant 0 : index
    %c2_55 = arith.constant 2 : index
    %c0_56 = arith.constant 0 : index
    %127 = vector.load %arg6[%c0_54, %c2_55, %c0_56] : memref<1x3x512xf32, #tpu.memory_space<vmem>>, vector<1x1x512xf32>
    %128 = vector.shape_cast %127 : vector<1x1x512xf32> to vector<1x512xf32>
    %129 = vector.shape_cast %126 : vector<1x512xf32> to vector<1x1x512xf32>
    tpu.vector_store %arg6[%c0_54, %c2_55, %c0_56], %129 {strides = array<i32>} : memref<1x3x512xf32, #tpu.memory_space<vmem>>, vector<1x1x512xf32>,
    %130 = vector.broadcast %14 : f32 to vector<1x512xf32>
    %131 = arith.mulf %130, %64 : vector<1x512xf32>
    %132 = vector.broadcast %29 : f32 to vector<1x512xf32>
    %133 = arith.mulf %132, %66 : vector<1x512xf32>
    %134 = arith.addf %131, %133 : vector<1x512xf32>
    %135 = vector.broadcast %44 : f32 to vector<1x512xf32>
    %136 = arith.mulf %135, %68 : vector<1x512xf32>
    %137 = arith.addf %134, %136 : vector<1x512xf32>
    %c0_57 = arith.constant 0 : index
    %c2_58 = arith.constant 2 : index
    %c0_59 = arith.constant 0 : index
    %138 = vector.load %arg7[%c0_57, %c2_58, %c0_59] : memref<1x3x512xf32, #tpu.memory_space<vmem>>, vector<1x1x512xf32>
    %139 = vector.shape_cast %138 : vector<1x1x512xf32> to vector<1x512xf32>
    %140 = vector.shape_cast %137 : vector<1x512xf32> to vector<1x1x512xf32>
    tpu.vector_store %arg7[%c0_57, %c2_58, %c0_59], %140 {strides = array<i32>} : memref<1x3x512xf32, #tpu.memory_space<vmem>>, vector<1x1x512xf32>,
    return
  }
  func.func @transform_0(%arg0: i32, %arg1: i32, %arg2: memref<18xf32, #tpu.memory_space<smem>>, %arg3: memref<6xf32, #tpu.memory_space<smem>>) -> (i32, i32, i32) {
    %c0_i32 = arith.constant 0 : i32
    %c0_i32_0 = arith.constant 0 : i32
    return %arg0, %c0_i32, %arg1 : i32, i32, i32
  }
  func.func @transform_1(%arg0: i32, %arg1: i32, %arg2: memref<18xf32, #tpu.memory_space<smem>>, %arg3: memref<6xf32, #tpu.memory_space<smem>>) -> (i32, i32, i32) {
    %c0_i32 = arith.constant 0 : i32
    %c0_i32_0 = arith.constant 0 : i32
    return %arg0, %c0_i32, %arg1 : i32, i32, i32
  }
  func.func @transform_2(%arg0: i32, %arg1: i32, %arg2: memref<18xf32, #tpu.memory_space<smem>>, %arg3: memref<6xf32, #tpu.memory_space<smem>>) -> (i32, i32, i32) {
    %c0_i32 = arith.constant 0 : i32
    %c0_i32_0 = arith.constant 0 : i32
    return %arg0, %c0_i32, %arg1 : i32, i32, i32
  }
  func.func @transform_3(%arg0: i32, %arg1: i32, %arg2: memref<18xf32, #tpu.memory_space<smem>>, %arg3: memref<6xf32, #tpu.memory_space<smem>>) -> (i32, i32, i32) {
    %c0_i32 = arith.constant 0 : i32
    %c0_i32_0 = arith.constant 0 : i32
    return %arg0, %c0_i32, %arg1 : i32, i32, i32
  }
}

</mosaic_0001>

<bundles_post_ra>
// kernel: tpu_custom_call.1
= control target key start
LH: loop header
LB: loop body
LE: loop exit
PB: predicated region body
PF: predicated region fallthrough
CT: control target
= control target key end

     0   :  { %s767_s0 = inlined_call_operand.vmem [shape: f32[18], index: 0, kind: input, shape index: {}]   ;;  %s768_s2 = inlined_call_operand.vmem [shape: f32[2,3,512], index: 2, kind: input, shape index: {}]   ;;  %s769_s3 = inlined_call_operand.vmem [shape: f32[2,3,512], index: 3, kind: input, shape index: {}]   ;;  %s770_s4 = inlined_call_operand.vmem [shape: f32[2,3,512], index: 4, kind: output, shape index: {0}]   ;;  %s771_s5 = inlined_call_operand.vmem [shape: f32[2,3,512], index: 5, kind: output, shape index: {1}]   ;;  %s772_s1 = inlined_call_operand.vmem [shape: f32[6], index: 1, kind: input, shape index: {}]  }
   0x1   :  { %s11_s20 = sshll.u32 %s767_s0, 4  ;;  %s15_s23 = sshll.u32 %s772_s1, 4  ;;  %s12_s20 = int_to_ptr.vmem [resolvable:$true] %s11_s20  ;;  %s16_s23 = int_to_ptr.vmem [resolvable:$true] %s15_s23 }
   0x2   :  { %s583_s24 = scalar_lea.vmem %s12_s20, 16  ;;  %p588_p1 = scmp.lt.s32.totalorder %s12_s20, %s12_s20 }
   0x3   :  { %p584_p0 = scmp.ne.s32.totalorder %s12_s20, %s583_s24  ;;  %p589_p2 = scmp.lt.s32.totalorder %s583_s24, %s583_s24 }
   0x5   :  { %p590_p3 = por %p589_p2, %p588_p1 }
   0x7   :  { %p591_p4 = pnand %p590_p3, %p584_p0 }
   0x9   :  { %594 = shalt.err (!%p591_p4)  }
   0xa   :  { %s633_s25 = smov [#allocation3]   ;;  %s595_s26 = scalar_lea.vmem %s16_s23, 16 }
   0xb   :  { %14 = dma.vmem_to_smem %s12_s20, 16, %s633_s25, [#allocation2] }
   0xc   :  { %p596_p5 = scmp.ne.s32.totalorder %s16_s23, %s595_s26  ;;  %p600_p6 = scmp.lt.s32.totalorder %s16_s23, %s16_s23 }
   0xd   :  { %p601_p7 = scmp.lt.s32.totalorder %s595_s26, %s595_s26 }
   0xf   :  { %p602_p8 = por %p601_p7, %p600_p6 }
  0x11   :  { %p603_p9 = pnand %p602_p8, %p596_p5 }
  0x13   :  { %606 = shalt.err (!%p603_p9)  }
  0x14   :  { %s634_s0 = smov [#allocation4]  }
  0x15   :  { %18 = dma.vmem_to_smem %s16_s23, 16, %s634_s0, [#allocation2] }
  0x16   :  { %619 = dma.done.wait [#allocation2], 32 }
  0x17   :  { %620 = vsyncadd [#allocation2], 4294967264 }
  0x18   :  { %20 = sfence }
  0x19   :  { %s671_s1 = smov 0   ;;  %s673_s27 = smov 0  }
  0x1a   :  { %s675_s28 = smov 0  }
  0x1b LB: > { %s38_s29 = sadd.s32 1, %s627_s27  ;;  %p534_p10 = scmp.ge.s32.totalorder %s631_s28, 1  ;;  %s631_s28 = sphi %s675_s28, %s26_s28   ;;  %s627_s27 = sphi %s673_s27, %s776_s27   ;;  %s623_s1 = sphi %s671_s1, %s775_s1  }
  0x1c   : > { %p40_p11 = scmp.ge.s32.totalorder %s38_s29, 2  ;;  %p192_p12 = scmp.lt.s32.totalorder %s631_s28, 3 }
  0x1e   : > { %s778_s29 = smov (%p40_p11, %s38_s29), 0  ;;  %p193_p13 = pnand %p534_p10, %p192_p12 }
  0x1f   : > { %p243_p0 = scmp.lt.s32.totalorder (!%p193_p13), %s623_s1, 1  ;;  %s689_s30 = smul.u32 (!%p193_p13), 9, %s623_s1  ;;  %v326_v10 = vlaneseq (!%p193_p13) }
  0x20   : > { %196 = sbr.rel (%p193_p13) target bundleno = 63 (0x3f), region = 28 }
  0x21   : > { %s691_s6 = smul.u32 (!%p193_p13), 3, %s623_s1  ;;  %s283_s7 = sld [smem:[#allocation3 + %s689_s30]] (!%p193_p13)  ;;  %vm726_vm0 = vcmp.lt.s32.totalorder (!%p193_p13), %v326_v10, 512 }
  0x22   : > { %s288_s8 = sadd.s32 (!%p193_p13), 3, %s689_s30  ;;  %s294_s17 = sadd.s32 (!%p193_p13), 6, %s689_s30 }
  0x23   : > { %s289_s10 = sld [smem:[#allocation3 + %s288_s8]] (!%p193_p13)  ;;  %s284_s26 = sadd.s32 (!%p193_p13), 1, %s689_s30 }
  0x24   : > { %s295_s18 = sld [smem:[#allocation3 + %s294_s17]] (!%p193_p13)  ;;  %s290_s0 = sadd.s32 (!%p193_p13), 4, %s689_s30 }
  0x25   : > { %s703_s19 = sld [smem:[#allocation4 + %s691_s6]] (!%p193_p13)  ;;  %s296_s8 = sadd.s32 (!%p193_p13), 7, %s689_s30 }
  0x26   : > { %s286_s12 = sadd.s32 (!%p193_p13), 2, %s689_s30  ;;  %s304_s17 = sadd.s32 (!%p193_p13), 2, %s691_s6 }
  0x27   : > { %s780_s1 = smov (!%p243_p0, %s623_s1), 1  ;;  %v316_v3 = vstv %s283_s7  ;;  %s717_s7 = sld [smem:[#allocation3 + %s290_s0]] }
  0x28   : > { %s553_s9 = sshll.u32 %s780_s1, 4  ;;  %s285_s1 = sld [smem:[#allocation3 + %s284_s26]] }
  0x29   : > { %s250_s13 = scalar_lea.vmem %s768_s2, %s553_s9  ;;  %s260_s16 = scalar_lea.vmem %s769_s3, %s553_s9  ;;  %v318_v7 = vstv %s289_s10 }
  0x2a   : > { %v306_v0 = vld [vmem:[%s250_s13] ss:$4 sm:$0xf]  ;;  %v543_v1 = vld [vmem:[%s250_s13 + $0x1] ss:$4 sm:$0xf]  ;;  %s708_s22 = scalar_lea.vmem %s770_s4, %s553_s9  ;;  %s713_s25 = scalar_lea.vmem %s771_s5, %s553_s9  ;;  %v321_v14 = vstv %s295_s18 }
  0x2b   : > { %v311_v2 = vld [vmem:[%s260_s16] ss:$4 sm:$0xf]  ;;  %v545_v4 = vld [vmem:[%s260_s16 + $0x1] ss:$4 sm:$0xf]  ;;  %v317_v6 = vmul.f32 %v316_v3, %v306_v0  ;;  %v319_v9 = vmul.f32 %v543_v1, %v318_v7  ;;  %v324_v18 = vstv %s703_s19 }
  0x2c   : > { %v544_v5 = vld [vmem:[%s250_s13 + $0x2] ss:$4 sm:$0xf]  ;;  %v331_v8 = vmul.f32 %v316_v3, %v311_v2  ;;  %v332_v12 = vmul.f32 %v545_v4, %v318_v7  ;;  %s302_s9 = sadd.s32 1, %s691_s6  ;;  %s297_s10 = sld [smem:[#allocation3 + %s296_s8]] }
  0x2d   : > { %v546_v11 = vld [vmem:[%s260_s16 + $0x2] ss:$4 sm:$0xf]  ;;  %v320_v13 = vadd.f32 %v319_v9, %v317_v6  ;;  %s721_s11 = sld [smem:[#allocation4 + %s302_s9]]  ;;  %v322_v16 = vmul.f32 %v544_v5, %v321_v14  ;;  %s292_s13 = sadd.s32 5, %s689_s30  ;;  %v339_v23 = vstv %s717_s7 }
  0x2e   : > { %v333_v15 = vadd.f32 %v332_v12, %v331_v8  ;;  %v334_v17 = vmul.f32 %v546_v11, %v321_v14  ;;  %s287_s14 = sld [smem:[#allocation3 + %s286_s12]]  ;;  %s298_s16 = sadd.s32 8, %s689_s30  ;;  %v337_v22 = vstv %s285_s1  ;;  %v340_v26 = vmul.f32 %v543_v1, %v339_v23 }
  0x2f   : > { %s730_s15 = sld [smem:[#allocation3 + %s292_s13]]  ;;  %v323_v20 = vadd.f32 %v322_v16, %v320_v13  ;;  %v338_v25 = vmul.f32 %v337_v22, %v306_v0  ;;  %v349_v27 = vmul.f32 %v337_v22, %v311_v2  ;;  %v350_v29 = vmul.f32 %v545_v4, %v339_v23 }
  0x30   : > { %v335_v21 = vadd.f32 %v334_v17, %v333_v15  ;;  %s299_s18 = sld [smem:[#allocation3 + %s298_s16]] }
  0x31   : > { %s735_s20 = sld [smem:[#allocation4 + %s304_s17]]  ;;  %v325_v24 = vadd.f32 %v324_v18, %v323_v20  ;;  %v341_v30 = vadd.f32 %v340_v26, %v338_v25  ;;  %v351_v34 = vadd.f32 %v350_v29, %v349_v27 }
  0x32   : > { %336 = vst.msk [vmem:[%s713_s25] ss:$4 sm:$0xf] %vm726_vm0, %v335_v21  ;;  %v342_v28 = vstv %s297_s10 }
  0x33   : > { %330 = vst.msk [vmem:[%s708_s22] ss:$4 sm:$0xf] %vm726_vm0, %v325_v24  ;;  %v343_v31 = vmul.f32 %v544_v5, %v342_v28  ;;  %v352_v32 = vmul.f32 %v546_v11, %v342_v28  ;;  %v345_v33 = vstv %s721_s11 }
  0x34   : > { %v356_v35 = vstv %s287_s14 }
  0x35   : > { %v358_v36 = vstv %s730_s15  ;;  %v344_v37 = vadd.f32 %v343_v31, %v341_v30  ;;  %v357_v38 = vmul.f32 %v356_v35, %v306_v0  ;;  %v368_v40 = vmul.f32 %v356_v35, %v311_v2 }
  0x36   : > { %v359_v39 = vmul.f32 %v543_v1, %v358_v36  ;;  %v353_v41 = vadd.f32 %v352_v32, %v351_v34  ;;  %v361_v42 = vstv %s299_s18  ;;  %v369_v43 = vmul.f32 %v545_v4, %v358_v36 }
  0x37   : > { %v346_v44 = vadd.f32 %v345_v33, %v344_v37  ;;  %v362_v46 = vmul.f32 %v544_v5, %v361_v42  ;;  %v371_v47 = vmul.f32 %v546_v11, %v361_v42  ;;  %v364_v48 = vstv %s735_s20 }
  0x38   : > { %v360_v45 = vadd.f32 %v359_v39, %v357_v38  ;;  %548 = vst.msk [vmem:[%s713_s25 + $0x1] ss:$4 sm:$0xf] %vm726_vm0, %v353_v41  ;;  %v370_v49 = vadd.f32 %v369_v43, %v368_v40 }
  0x39   : > { %547 = vst.msk [vmem:[%s708_s22 + $0x1] ss:$4 sm:$0xf] %vm726_vm0, %v346_v44 }
  0x3a   : > { %v363_v50 = vadd.f32 %v362_v46, %v360_v45  ;;  %v372_v51 = vadd.f32 %v371_v47, %v370_v49 }
  0x3c   : > { %v365_v52 = vadd.f32 %v364_v48, %v363_v50  ;;  %550 = vst.msk [vmem:[%s713_s25 + $0x2] ss:$4 sm:$0xf] %vm726_vm0, %v372_v51 }
  0x3e   : > { %549 = vst.msk [vmem:[%s708_s22 + $0x2] ss:$4 sm:$0xf] %vm726_vm0, %v365_v52 }
  0x3f PF: > { %s26_s28 = sadd.s32 1, %s631_s28   ;;  %s775_s1 = smov %s627_s27 }
  0x40   : > { %p23_p1 = scmp.ge.s32.totalorder %s26_s28, 4   ;;  %s776_s27 = smov %s778_s29 }
  0x42   :  { %25 = sbr.rel (!%p23_p1) target bundleno = 27 (0x1b), region = 81 }

</bundles_post_ra>
